<compile_context>
chip_gen: v5e
topology: v5e:2x2
jax: 0.10.0
libtpu: 0.0.40
codegen_flags: <defaults>
</compile_context>

<pallas_src>
import jax
import jax.numpy as jnp
from jax.experimental import pallas as pl
from jax.experimental.pallas import tpu as pltpu


# ----------------------------------------------------------------------------
# helpers
# ----------------------------------------------------------------------------
def _round_up(x, m):
    return ((x + m - 1) // m) * m


def delta_conv1x1_weight(out_channels, in_channels, dtype=jnp.float32):
    """Mirrors initialize_conv1d_as_delta: identity ('delta') 1x1-conv weight,
    Conv1d weight (C_out, C_in, 1) with the kernel dim dropped."""
    w = jnp.zeros((out_channels, in_channels), dtype=dtype)
    n = min(out_channels, in_channels)
    return w.at[jnp.arange(n), jnp.arange(n)].set(1.0)


def _vmem_budget_and_tlmax():
    """Scoped-VMEM limit + max L-tile, per TPU generation.
    v5e/v6e (128 MiB physical VMEM): 64 MiB scoped, TL up to 2048.
    v7x     (64 MiB physical VMEM):  40 MiB scoped, TL up to 1024."""
    phys = 64 * 1024 * 1024  # conservative default (v7x-sized)
    try:
        info = pltpu.get_tpu_info()
        cap = getattr(info, "vmem_capacity_bytes", None)
        if cap:
            phys = int(cap)
    except Exception:
        pass
    if phys >= 100 * 1024 * 1024:
        return 64 * 1024 * 1024, 2048
    return 40 * 1024 * 1024, 1024


def _choose_tile_l(L, c_in, c_out, in_itemsize, out_itemsize,
                   vmem_limit, tl_max, weight_buffers):
    """Largest 128-multiple L tile whose per-step VMEM footprint
    (double-buffered input/output tiles + resident weights + in-kernel f32
    intermediates) fits in ~80% of the scoped-VMEM limit."""
    weights_bytes = weight_buffers * (2 * c_in * c_out + c_out * c_out) * 2  # bf16
    avail = int(0.8 * vmem_limit) - weights_bytes
    per_tl = (2 * 2 * c_in * in_itemsize       # x1,x2 tiles, double-buffered
              + 2 * c_out * out_itemsize       # output tile, double-buffered
              + 6 * c_out * 4                  # f32 temps: a1,a2,diff,sim,fused,out
              + (2 * c_in + c_out) * 2)        # bf16 operands fed to the MXU
    tl = max(128, (avail // max(per_tl, 1)) // 128 * 128)
    return int(min(tl, tl_max, _round_up(L, 128)))


# ----------------------------------------------------------------------------
# Kernel 1: FeatureFusionBlock (conv1x1 + lrelu + sigmoid gate + mRCAB conv)
#   a1 = lrelu(W1 @ x1); a2 = lrelu(W2 @ x2)
#   sim = sigmoid(a1 - a2);  fused = a2 + sim*(a1 - a2)
#   out = W3 @ fused
# ----------------------------------------------------------------------------
def _fusion_kernel(x1_ref, x2_ref, w1_ref, w2_ref, w3_ref, o_ref):
    w1 = w1_ref[...]                 # (C_out, C_in)  compute dtype (bf16)
    w2 = w2_ref[...]
    w3 = w3_ref[...]                 # (C_out, C_out)
    cdt = w1.dtype

    # Inputs arrive in their HBM dtype (f32 or bf16); cast on the VPU here --
    # no separate wrapper-side convert pass over HBM.
    x1 = x1_ref[0].astype(cdt)       # (C_in, TL)
    x2 = x2_ref[0].astype(cdt)

    # 1x1 conv == channel matmul on the MXU, f32 accumulation.
    a1 = jnp.dot(w1, x1, preferred_element_type=jnp.float32)   # (C_out, TL)
    a2 = jnp.dot(w2, x2, preferred_element_type=jnp.float32)

    # LeakyReLU(negative_slope=0.1) -- matches the module's nn.LeakyReLU(0.1).
    a1 = jnp.where(a1 >= 0, a1, 0.1 * a1)
    a2 = jnp.where(a2 >= 0, a2, 0.1 * a2)

    # sigmoid gate + convex fusion.  sigmoid(d) = 0.5*tanh(0.5*d)+0.5 -> one
    # EUP op, no approx-reciprocal error term.
    diff = a1 - a2
    sim = 0.5 * jnp.tanh(0.5 * diff) + 0.5
    fused = a2 + sim * diff          # == a1*sim + a2*(1-sim)

    # mRCAB placeholder: final 1x1 conv.
    out = jnp.dot(w3, fused.astype(cdt), preferred_element_type=jnp.float32)
    o_ref[0] = out.astype(o_ref.dtype)


def feature_fusion_block(acq1, acq2, w1, w2, w3, *,
                         compute_dtype=jnp.bfloat16,
                         out_dtype=jnp.bfloat16,
                         channel_align=8):
    """acq1, acq2: (N, C_in, L) float32 or bfloat16 (NCL, as torch Conv1d).
    w1, w2: (C_out, C_in); w3: (C_out, C_out).
    Returns (N, C_out, L) in `out_dtype` (bf16 by default: halves writeback)."""
    N, C_in, L = acq1.shape
    C_out = w1.shape[0]

    # Channel padding: at least sublane-aligned; use 128/256 in production for
    # full MXU rows/cols.  Zero-padded channels are mathematically inert.
    C_in_p = _round_up(C_in, channel_align)
    C_out_p = _round_up(C_out, channel_align)

    vmem_limit, tl_max = _vmem_budget_and_tlmax()
    # Single-buffer the resident (constant-index) weights only where it pays
    # off: small-VMEM parts (v7x) with large channel counts.
    single_buffer_weights = (vmem_limit < 64 * 1024 * 1024) and (C_out_p >= 512)
    weight_buffers = 1 if single_buffer_weights else 2

    in_itemsize = jnp.dtype(acq1.dtype).itemsize
    out_itemsize = jnp.dtype(out_dtype).itemsize
    TL = _choose_tile_l(L, C_in_p, C_out_p, in_itemsize, out_itemsize,
                        vmem_limit, tl_max, weight_buffers)
    L_p = _round_up(L, TL)

    # Pad only when needed -- aligned inputs pass straight through with zero
    # extra wrapper-side HBM traffic (the bf16 cast happens in-kernel).
    x1, x2 = acq1, acq2
    if (C_in_p, L_p) != (C_in, L):
        pad = ((0, 0), (0, C_in_p - C_in), (0, L_p - L))
        x1 = jnp.pad(x1, pad)
        x2 = jnp.pad(x2, pad)

    def pad_w(w, rows, cols):
        wc = w.astype(compute_dtype)
        if wc.shape == (rows, cols):
            return wc
        return jnp.zeros((rows, cols), compute_dtype) \
                  .at[:w.shape[0], :w.shape[1]].set(wc)

    w1c = pad_w(w1, C_out_p, C_in_p)
    w2c = pad_w(w2, C_out_p, C_in_p)
    w3c = pad_w(w3, C_out_p, C_out_p)

    grid = (N, L_p // TL)

    def w_spec(rows, cols):
        if single_buffer_weights:
            return pl.BlockSpec((rows, cols), lambda b, l: (0, 0),
                                pipeline_mode=pl.Buffered(1))
        return pl.BlockSpec((rows, cols), lambda b, l: (0, 0))

    # Advisory cost so XLA schedules neighboring ops around the custom call.
    flops = 2 * N * L_p * (2 * C_out_p * C_in_p + C_out_p * C_out_p)
    bytes_accessed = (2 * N * C_in_p * L_p * in_itemsize
                      + (2 * C_in_p * C_out_p + C_out_p * C_out_p) * 2
                      + N * C_out_p * L_p * out_itemsize)
    cost = pl.CostEstimate(flops=int(flops),
                           transcendentals=int(N * C_out_p * L_p),
                           bytes_accessed=int(bytes_accessed))

    out = pl.pallas_call(
        _fusion_kernel,
        out_shape=jax.ShapeDtypeStruct((N, C_out_p, L_p), out_dtype),
        grid_spec=pltpu.PrefetchScalarGridSpec(
            num_scalar_prefetch=0,
            grid=grid,
            in_specs=[
                pl.BlockSpec((1, C_in_p, TL), lambda b, l: (b, 0, l)),
                pl.BlockSpec((1, C_in_p, TL), lambda b, l: (b, 0, l)),
                # Weights: constant index_map -> loaded once, stay resident.
                w_spec(C_out_p, C_in_p),
                w_spec(C_out_p, C_in_p),
                w_spec(C_out_p, C_out_p),
            ],
            out_specs=pl.BlockSpec((1, C_out_p, TL), lambda b, l: (b, 0, l)),
        ),
        compiler_params=pltpu.CompilerParams(
            dimension_semantics=("parallel", "parallel"),
            vmem_limit_bytes=vmem_limit,
        ),
        cost_estimate=cost,
    )(x1, x2, w1c, w2c, w3c)

    if (C_out_p, L_p) != (C_out, L):
        out = out[:, :C_out, :L]
    return out


# ----------------------------------------------------------------------------
# Kernel 2: the *active* ViTfuser.forward fusion
#   features_comb = (p1*features + p2*features_ref) / (p1 + p2 + eps)
# with per-channel params broadcast over (batch, L).
# ----------------------------------------------------------------------------
def _combine_kernel(s1_ref, s2_ref, f_ref, fr_ref, o_ref):
    s1 = s1_ref[...]                 # (C, 1) f32 = p1 / (p1+p2+eps)
    s2 = s2_ref[...]                 # (C, 1) f32 = p2 / (p1+p2+eps)
    o_ref[0] = (s1 * f_ref[0] + s2 * fr_ref[0]).astype(o_ref.dtype)


def vitfuser_feature_combine(features, features_ref, param1, param2, *,
                             epsilon=1e-6, channel_align=8):
    N, C, L = features.shape
    C_p = _round_up(C, channel_align)

    vmem_limit, tl_max = _vmem_budget_and_tlmax()
    itemsize = jnp.dtype(features.dtype).itemsize
    per_tl = 3 * 2 * C_p * itemsize               # 3 tiles, double-buffered
    TL = max(128, min((int(0.8 * vmem_limit) // per_tl) // 128 * 128,
                      tl_max, _round_up(L, 128)))
    L_p = _round_up(L, TL)

    f, fr = features, features_ref
    if (C_p, L_p) != (C, L):
        pad = ((0, 0), (0, C_p - C), (0, L_p - L))
        f = jnp.pad(f, pad)
        fr = jnp.pad(fr, pad)

    # Tiny (C,)-sized prep: fold the 1/(p1+p2+eps) divide here so the kernel is
    # pure mul/add on the VPU.
    inv = 1.0 / (param1 + param2 + epsilon)
    s1 = jnp.zeros((C_p, 1), jnp.float32).at[:C, 0].set((param1 * inv).astype(jnp.float32))
    s2 = jnp.zeros((C_p, 1), jnp.float32).at[:C, 0].set((param2 * inv).astype(jnp.float32))

    grid = (N, L_p // TL)
    out = pl.pallas_call(
        _combine_kernel,
        out_shape=jax.ShapeDtypeStruct((N, C_p, L_p), features.dtype),
        grid_spec=pltpu.PrefetchScalarGridSpec(
            num_scalar_prefetch=0,
            grid=grid,
            in_specs=[
                pl.BlockSpec((C_p, 1), lambda b, l: (0, 0)),
                pl.BlockSpec((C_p, 1), lambda b, l: (0, 0)),
                pl.BlockSpec((1, C_p, TL), lambda b, l: (b, 0, l)),
                pl.BlockSpec((1, C_p, TL), lambda b, l: (b, 0, l)),
            ],
            out_specs=pl.BlockSpec((1, C_p, TL), lambda b, l: (b, 0, l)),
        ),
        compiler_params=pltpu.CompilerParams(
            dimension_semantics=("parallel", "parallel"),
            vmem_limit_bytes=vmem_limit,
        ),
    )(s1, s2, f, fr)

    if (C_p, L_p) != (C, L):
        out = out[:, :C, :L]
    return out


# ----------------------------------------------------------------------------
# Pure-JAX f32 references
# ----------------------------------------------------------------------------
def feature_fusion_block_ref(acq1, acq2, w1, w2, w3):
    def conv1x1(x, w):
        return jnp.einsum('oc,ncl->nol', w, x)

    def lrelu(x):
        return jnp.where(x >= 0, x, 0.1 * x)

    a1 = lrelu(conv1x1(acq1, w1))
    a2 = lrelu(conv1x1(acq2, w2))
    sim = jax.nn.sigmoid(a1 - a2)
    fused = a1 * sim + a2 * (1.0 - sim)
    return conv1x1(fused, w3)


def vitfuser_feature_combine_ref(f, fr, p1, p2, epsilon=1e-6):
    p1e = p1.reshape(1, -1, 1)
    p2e = p2.reshape(1, -1, 1)
    return (p1e * f + p2e * fr) / (p1e + p2e + epsilon)


if __name__ == "__main__":
    key = jax.random.PRNGKey(0)
    k1, k2, k3, k4, k5, k6, k7 = jax.random.split(key, 7)

    # Small shapes consistent with the module's (B, C, L) feature layout.
    N, C_in, C_out, L = 2, 4, 4, 128
    acq1 = jax.random.normal(k1, (N, C_in, L), dtype=jnp.float32)
    acq2 = jax.random.normal(k2, (N, C_in, L), dtype=jnp.float32)

    # (a) delta (identity) init, as in initialize_conv1d_as_delta.
    w1_d = delta_conv1x1_weight(C_out, C_in)
    w2_d = delta_conv1x1_weight(C_out, C_in)
    w3_d = delta_conv1x1_weight(C_out, C_out)
    out_d = jax.block_until_ready(feature_fusion_block(acq1, acq2, w1_d, w2_d, w3_d))
    ref_d = feature_fusion_block_ref(acq1, acq2, w1_d, w2_d, w3_d)
    assert out_d.shape == (N, C_out, L)
    assert jnp.allclose(out_d.astype(jnp.float32), ref_d, atol=5e-2, rtol=5e-2), \
        "fusion-block mismatch (delta weights)"

    # (b) random weights -- exercises the matmul / gate numerics properly.
    w1_r = 0.5 * jax.random.normal(k3, (C_out, C_in), dtype=jnp.float32)
    w2_r = 0.5 * jax.random.normal(k4, (C_out, C_in), dtype=jnp.float32)
    w3_r = 0.5 * jax.random.normal(k5, (C_out, C_out), dtype=jnp.float32)
    out_r = jax.block_until_ready(feature_fusion_block(acq1, acq2, w1_r, w2_r, w3_r))
    ref_r = feature_fusion_block_ref(acq1, acq2, w1_r, w2_r, w3_r)
    assert jnp.allclose(out_r.astype(jnp.float32), ref_r, atol=5e-2, rtol=5e-2), \
        "fusion-block mismatch (random weights)"

    # (c) the active forward-path fusion (param1/param2 weighted combination).
    p1 = jnp.full((C_in,), 0.7, dtype=jnp.float32)
    p2 = 0.3 + 0.02 * jax.random.normal(k6, (C_in,), dtype=jnp.float32)
    feats = jax.random.normal(k7, (N, C_in, L), dtype=jnp.float32)
    comb = jax.block_until_ready(vitfuser_feature_combine(feats, acq2, p1, p2))
    comb_ref = vitfuser_feature_combine_ref(feats, acq2, p1, p2)
    assert comb.shape == (N, C_in, L)
    assert jnp.allclose(comb, comb_ref, atol=1e-4, rtol=1e-4), \
        "feature-combine mismatch"

    print("KERNEL_OK")
</pallas_src>

<mosaic_0001>
module attributes {stable_mosaic.version = 11 : i64} {
  func.func @_fusion_kernel(%arg0: i32, %arg1: i32, %arg2: memref<1x8x128xf32, #tpu.memory_space<vmem>>, %arg3: memref<1x8x128xf32, #tpu.memory_space<vmem>>, %arg4: memref<8x8xbf16, #tpu.memory_space<vmem>>, %arg5: memref<8x8xbf16, #tpu.memory_space<vmem>>, %arg6: memref<8x8xbf16, #tpu.memory_space<vmem>>, %arg7: memref<1x8x128xbf16, #tpu.memory_space<vmem>>) attributes {dimension_semantics = [#tpu.dimension_semantics<parallel>, #tpu.dimension_semantics<parallel>], iteration_bounds = array<i64: 2, 1>, scalar_prefetch = 0 : i64, scratch_operands = 0 : i64, tpu.core_type = #tpu.core_type<tc>, window_params = [{transform_indices = @transform_0, window_bounds = array<i64: 1, 8, 128>}, {transform_indices = @transform_1, window_bounds = array<i64: 1, 8, 128>}, {pipeline_mode = #tpu.pipeline_mode<synchronous>, transform_indices = @transform_2, window_bounds = array<i64: 8, 8>}, {pipeline_mode = #tpu.pipeline_mode<synchronous>, transform_indices = @transform_3, window_bounds = array<i64: 8, 8>}, {pipeline_mode = #tpu.pipeline_mode<synchronous>, transform_indices = @transform_4, window_bounds = array<i64: 8, 8>}, {transform_indices = @transform_5, window_bounds = array<i64: 1, 8, 128>}]} {
    %c0 = arith.constant 0 : index
    %c0_0 = arith.constant 0 : index
    %0 = vector.load %arg4[%c0, %c0_0] : memref<8x8xbf16, #tpu.memory_space<vmem>>, vector<8x8xbf16>
    %c0_1 = arith.constant 0 : index
    %c0_2 = arith.constant 0 : index
    %1 = vector.load %arg5[%c0_1, %c0_2] : memref<8x8xbf16, #tpu.memory_space<vmem>>, vector<8x8xbf16>
    %c0_3 = arith.constant 0 : index
    %c0_4 = arith.constant 0 : index
    %2 = vector.load %arg6[%c0_3, %c0_4] : memref<8x8xbf16, #tpu.memory_space<vmem>>, vector<8x8xbf16>
    %c0_5 = arith.constant 0 : index
    %c0_6 = arith.constant 0 : index
    %c0_7 = arith.constant 0 : index
    %3 = vector.load %arg2[%c0_5, %c0_6, %c0_7] : memref<1x8x128xf32, #tpu.memory_space<vmem>>, vector<1x8x128xf32>
    %4 = vector.shape_cast %3 : vector<1x8x128xf32> to vector<8x128xf32>
    %5 = arith.truncf %4 : vector<8x128xf32> to vector<8x128xbf16>
    %c0_8 = arith.constant 0 : index
    %c0_9 = arith.constant 0 : index
    %c0_10 = arith.constant 0 : index
    %6 = vector.load %arg3[%c0_8, %c0_9, %c0_10] : memref<1x8x128xf32, #tpu.memory_space<vmem>>, vector<1x8x128xf32>
    %7 = vector.shape_cast %6 : vector<1x8x128xf32> to vector<8x128xf32>
    %8 = arith.truncf %7 : vector<8x128xf32> to vector<8x128xbf16>
    %cst = arith.constant dense<0.000000e+00> : vector<8x128xf32>
    %9 = tpu.matmul %0, %5, %cst {dimension_numbers = #tpu.dot_dimension_numbers<[1], [0], [0], [1], [0, 0, 1, 1], [], []>} : vector<8x8xbf16>, vector<8x128xbf16>, vector<8x128xf32> -> vector<8x128xf32>
    %cst_11 = arith.constant dense<0.000000e+00> : vector<8x128xf32>
    %10 = tpu.matmul %1, %8, %cst_11 {dimension_numbers = #tpu.dot_dimension_numbers<[1], [0], [0], [1], [0, 0, 1, 1], [], []>} : vector<8x8xbf16>, vector<8x128xbf16>, vector<8x128xf32> -> vector<8x128xf32>
    %cst_12 = arith.constant 0.000000e+00 : f32
    %11 = vector.broadcast %cst_12 : f32 to vector<8x128xf32>
    %12 = arith.cmpf oge, %9, %11 : vector<8x128xf32>
    %cst_13 = arith.constant 1.000000e-01 : f32
    %13 = vector.broadcast %cst_13 : f32 to vector<8x128xf32>
    %14 = arith.mulf %13, %9 : vector<8x128xf32>
    %15 = arith.select %12, %9, %14 : vector<8x128xi1>, vector<8x128xf32>
    %cst_14 = arith.constant 0.000000e+00 : f32
    %16 = vector.broadcast %cst_14 : f32 to vector<8x128xf32>
    %17 = arith.cmpf oge, %10, %16 : vector<8x128xf32>
    %cst_15 = arith.constant 1.000000e-01 : f32
    %18 = vector.broadcast %cst_15 : f32 to vector<8x128xf32>
    %19 = arith.mulf %18, %10 : vector<8x128xf32>
    %20 = arith.select %17, %10, %19 : vector<8x128xi1>, vector<8x128xf32>
    %21 = arith.subf %15, %20 : vector<8x128xf32>
    %cst_16 = arith.constant 5.000000e-01 : f32
    %22 = vector.broadcast %cst_16 : f32 to vector<8x128xf32>
    %23 = arith.mulf %22, %21 : vector<8x128xf32>
    %24 = math.tanh %23 : vector<8x128xf32>
    %cst_17 = arith.constant 5.000000e-01 : f32
    %25 = vector.broadcast %cst_17 : f32 to vector<8x128xf32>
    %26 = arith.mulf %25, %24 : vector<8x128xf32>
    %cst_18 = arith.constant 5.000000e-01 : f32
    %27 = vector.broadcast %cst_18 : f32 to vector<8x128xf32>
    %28 = arith.addf %26, %27 : vector<8x128xf32>
    %29 = arith.mulf %28, %21 : vector<8x128xf32>
    %30 = arith.addf %20, %29 : vector<8x128xf32>
    %31 = arith.truncf %30 : vector<8x128xf32> to vector<8x128xbf16>
    %cst_19 = arith.constant dense<0.000000e+00> : vector<8x128xf32>
    %32 = tpu.matmul %2, %31, %cst_19 {dimension_numbers = #tpu.dot_dimension_numbers<[1], [0], [0], [1], [0, 0, 1, 1], [], []>} : vector<8x8xbf16>, vector<8x128xbf16>, vector<8x128xf32> -> vector<8x128xf32>
    %33 = arith.truncf %32 : vector<8x128xf32> to vector<8x128xbf16>
    %c0_20 = arith.constant 0 : index
    %c0_21 = arith.constant 0 : index
    %c0_22 = arith.constant 0 : index
    %34 = vector.load %arg7[%c0_20, %c0_21, %c0_22] : memref<1x8x128xbf16, #tpu.memory_space<vmem>>, vector<1x8x128xbf16>
    %35 = vector.shape_cast %34 : vector<1x8x128xbf16> to vector<8x128xbf16>
    %36 = vector.shape_cast %33 : vector<8x128xbf16> to vector<1x8x128xbf16>
    tpu.vector_store %arg7[%c0_20, %c0_21, %c0_22], %36 {strides = array<i32>} : memref<1x8x128xbf16, #tpu.memory_space<vmem>>, vector<1x8x128xbf16>,
    return
  }
  func.func @transform_0(%arg0: i32, %arg1: i32) -> (i32, i32, i32) {
    %c0_i32 = arith.constant 0 : i32
    %c0_i32_0 = arith.constant 0 : i32
    return %arg0, %c0_i32, %arg1 : i32, i32, i32
  }
  func.func @transform_1(%arg0: i32, %arg1: i32) -> (i32, i32, i32) {
    %c0_i32 = arith.constant 0 : i32
    %c0_i32_0 = arith.constant 0 : i32
    return %arg0, %c0_i32, %arg1 : i32, i32, i32
  }
  func.func @transform_2(%arg0: i32, %arg1: i32) -> (i32, i32) {
    %c0_i32 = arith.constant 0 : i32
    %c0_i32_0 = arith.constant 0 : i32
    %c0_i32_1 = arith.constant 0 : i32
    return %c0_i32, %c0_i32_0 : i32, i32
  }
  func.func @transform_3(%arg0: i32, %arg1: i32) -> (i32, i32) {
    %c0_i32 = arith.constant 0 : i32
    %c0_i32_0 = arith.constant 0 : i32
    %c0_i32_1 = arith.constant 0 : i32
    return %c0_i32, %c0_i32_0 : i32, i32
  }
  func.func @transform_4(%arg0: i32, %arg1: i32) -> (i32, i32) {
    %c0_i32 = arith.constant 0 : i32
    %c0_i32_0 = arith.constant 0 : i32
    %c0_i32_1 = arith.constant 0 : i32
    return %c0_i32, %c0_i32_0 : i32, i32
  }
  func.func @transform_5(%arg0: i32, %arg1: i32) -> (i32, i32, i32) {
    %c0_i32 = arith.constant 0 : i32
    %c0_i32_0 = arith.constant 0 : i32
    return %arg0, %c0_i32, %arg1 : i32, i32, i32
  }
}

</mosaic_0001>

<bundles_post_ra>
// kernel: tpu_custom_call.1
= control target key start
LH: loop header
LB: loop body
LE: loop exit
PB: predicated region body
PF: predicated region fallthrough
CT: control target
= control target key end

     0   :  { %s1151_s0 = inlined_call_operand.hbm [shape: f32[2,8,128], index: 0, kind: input, shape index: {}]   ;;  %s1152_s1 = inlined_call_operand.hbm [shape: f32[2,8,128], index: 1, kind: input, shape index: {}]   ;;  %s1153_s2 = inlined_call_operand.hbm [shape: bf16[8,8], index: 2, kind: input, shape index: {}]   ;;  %s1154_s3 = inlined_call_operand.hbm [shape: bf16[8,8], index: 3, kind: input, shape index: {}]   ;;  %s1155_s4 = inlined_call_operand.hbm [shape: bf16[8,8], index: 4, kind: input, shape index: {}]   ;;  %s1156_s5 = inlined_call_operand.hbm [shape: bf16[2,8,128], index: 5, kind: output, shape index: {}]  }
   0x1   :  { %1159 = sst [smem:[#allocation20_spill]] %s1153_s2 }
   0x2   :  { %1160 = sst [smem:[#allocation21_spill]] %s1154_s3 }
   0x3   :  { %1161 = sst [smem:[#allocation22_spill]] %s1155_s4 }
   0x4   :  { %10 = vsyncpa [#allocation3], 0 }
   0x5   :  { %12 = vsyncpa [#allocation3 + $0x1], 0 }
   0x6   :  { %13 = vsyncpa [#allocation6], 0 }
   0x7   :  { %15 = vsyncpa [#allocation6 + $0x1], 0 }
   0x8   :  { %16 = vsyncpa [#allocation9], 0 }
   0x9   :  { %17 = vsyncpa [#allocation4], 0 }
   0xa   :  { %19 = vsyncpa [#allocation4 + $0x1], 0  ;;  %s980_s18 = smov 0   ;;  %s982_s19 = smov 0  }
   0xb   :  { %s984_s20 = smov 0   ;;  %s986_s21 = smov 0  }
   0xc   :  { %s988_s22 = smov 0   ;;  %s990_s23 = smov 0  }
   0xd LB: > { %1162 = sst [smem:[#allocation17_spill]] %s941_s22  ;;  %s1011_s24 = sadd.s32 4294967295, %s945_s23   ;;  %s945_s23 = sphi %s990_s23, %s25_s23   ;;  %s941_s22 = sphi %s988_s22, %s1175_s22   ;;  %s937_s21 = sphi %s986_s21, %s1174_s21   ;;  %s933_s20 = sphi %s984_s20, %s1178_s20   ;;  %s929_s19 = sphi %s982_s19, %s1177_s19   ;;  %s925_s18 = sphi %s980_s18, %s1176_s18  }
   0xe   : > { %s577_s25 = sadd.s32 4294967294, %s945_s23   ;;  %p59_p0 = scmp.ne.s32.totalorder %s929_s19, %s925_s18 }
   0xf   : > { %p60_p1 = scmp.eq.s32.totalorder %s1011_s24, 0  ;;  %p176_p2 = scmp.eq.s32.totalorder %s1011_s24, 1 }
  0x10   : > { %p182_p3 = scmp.eq.s32.totalorder %s577_s25, 1  ;;  %p578_p5 = scmp.ge.s32.totalorder %s945_s23, 1 }
  0x11   : > { %p1020_p4 = por %p60_p1, %p59_p0  ;;  %p189_p7 = scmp.lt.s32.totalorder %s945_s23, 3 }
  0x12   : > { %p1025_p6 = por %p182_p3, %p59_p0  ;;  %s1165_s2 = sld [smem:[#allocation20_spill]] }
  0x13   : > { %p1033_p8 = pnand %p578_p5, %p189_p7  ;;  %p582_p9 = scmp.ge.s32.totalorder %s945_s23, 2 }
  0x14   : > { %s947_s7 = smov [#allocation7]   ;;  %s1167_s3 = sld [smem:[#allocation21_spill]] }
  0x15   : > { %p619_p10 = pneg %p1033_p8  ;;  %s203_s8 = sshll.u32 %s947_s7, 4  ;;  %s204_s8 = int_to_ptr.vmem [resolvable:$true] %s203_s8 }
  0x16   : > { %s1168_s4 = sld [smem:[#allocation22_spill]]  ;;  %s948_s15 = smov [#allocation8]  }
  0x17   : > { %p620_p11 = pnand %p619_p10, %p60_p1  ;;  %s215_s16 = sshll.u32 %s948_s15, 4  ;;  %s216_s16 = int_to_ptr.vmem [resolvable:$true] %s215_s16 }
  0x18   : > { %s201_s30 = sshll.u32 %s1165_s2, 4  ;;  %s949_s17 = smov [#allocation10]   ;;  %s202_s30 = int_to_ptr.hbm [resolvable:$true] %s201_s30 }
  0x19   : > { %622 = dma.hbm_to_vmem [thread:$0]  (!%p620_p11), %s202_s30, 64, %s204_s8, [#allocation6]  }
  0x1a   : > { %s213_s11 = sshll.u32 %s1167_s3, 4  ;;  %s227_s25 = sshll.u32 %s949_s17, 4  ;;  %s214_s11 = int_to_ptr.hbm [resolvable:$true] %s213_s11  ;;  %s228_s25 = int_to_ptr.vmem [resolvable:$true] %s227_s25 }
  0x1b   : > { %625 = dma.hbm_to_vmem [thread:$0]  (!%p620_p11), %s214_s11, 64, %s216_s16, [#allocation9]  }
  0x1c   : > { %s225_s14 = sshll.u32 %s1168_s4, 4  ;;  %s37_s28 = sadd.s32 1, %s941_s22  ;;  %s226_s14 = int_to_ptr.hbm [resolvable:$true] %s225_s14 }
  0x1d   : > { %628 = dma.hbm_to_vmem [thread:$0]  (!%p620_p11), %s226_s14, 64, %s228_s25, [#allocation9]  }
  0x1e   : > { %p39_p12 = scmp.ge.s32.totalorder %s37_s28, 2  ;;  %s46_s29 = sadd.s32 1, %s933_s20 }
  0x1f   : > { %p53_p13 = scmp.ne.s32.totalorder %s933_s20, %s929_s19  ;;  %p54_p0 = scmp.eq.s32.totalorder %s945_s23, 0 }
  0x20   : > { %s1180_s28 = smov (%p39_p12, %s37_s28), 0  ;;  %p643_p7 = scmp.lt.s32.totalorder %s945_s23, 2 }
  0x21   : > { %1169 = sst [smem:[#allocation18_spill]] %s1180_s28  ;;  %p1055_p3 = por %p54_p0, %p53_p13 }
  0x22   : > { %p1061_p5 = por %p176_p2, %p53_p13  ;;  %s41_s8 = ssub.s32 %s941_s22, %s1180_s28 }
  0x23   : > { %p44_p10 = scmp.eq.s32.totalorder %s41_s8, 0  ;;  %s238_s9 = sand.u32 1, %s933_s20  }
  0x24   : > { %s583_s10 = sshll.u32 %s238_s9, 3  ;;  %s584_s12 = sshll.u32 %s941_s22, 3 }
  0x25   : > { %s1070_s11 = scalar_select %p44_p10, %s933_s20, %s46_s29  }
  0x26   : > { %s247_s15 = scalar_lea.hbm %s1151_s0, %s584_s12  ;;  %s242_s16 = scalar_lea.vmem [#allocation2], %s583_s10 }
  0x27   : > { %1172 = sst [smem:[#allocation19_spill]] %s1070_s11  ;;  %s251_s17 = sshll.u32 %s242_s16, 4  ;;  %s252_s17 = int_to_ptr.vmem [resolvable:$true] %s251_s17 }
  0x28   : > { %s249_s25 = sshll.u32 %s247_s15, 4  ;;  %p630_p2 = pnand %p643_p7, %p1055_p3  ;;  %s250_s25 = int_to_ptr.hbm [resolvable:$true] %s249_s25 }
  0x29   : > { %s267_s8 = scalar_lea.hbm %s1152_s1, %s584_s12  ;;  %s258_s4 = sand.u32 1, %s945_s23  }
  0x2a   : > { %s239_s28 = scalar_lea.sflag [#allocation3], %s238_s9  ;;  %s269_s29 = sshll.u32 %s267_s8, 4  ;;  %s270_s29 = int_to_ptr.hbm [resolvable:$true] %s269_s29 }
  0x2b   : > { %632 = dma.hbm_to_vmem [thread:$0]  (!%p630_p2), %s250_s25, 128, %s252_s17, %s239_s28  }
  0x2c   : > { %s262_s22 = scalar_lea.vmem [#allocation5], %s583_s10  ;;  %s259_s13 = scalar_lea.sflag [#allocation6], %s258_s4 }
  0x2d   : > { %s271_s11 = sshll.u32 %s262_s22, 4  ;;  %280 = sbr.rel (%p1033_p8) target bundleno = 359 (0x167), region = 40  ;;  %s272_s11 = int_to_ptr.vmem [resolvable:$true] %s271_s11 }
  0x2e   : > { %635 = dma.hbm_to_vmem [thread:$0]  (!%p630_p2), %s270_s29, 128, %s272_s11, %s259_s13  }
  0x2f   : > { %s1085_s30 = sand.u32 (!%p1033_p8), 1, %s929_s19  }
  0x30   : > { %s588_s2 = sshll.u32 (!%p1033_p8), %s1085_s30, 3  ;;  %s283_s3 = scalar_lea.sflag (!%p1033_p8), [#allocation3], %s1085_s30 }
  0x31   : > { %s286_s9 = scalar_lea.vmem (!%p1033_p8), [#allocation2], %s588_s2 }
  0x32   : > { %904 = dma.done.wait (%p1020_p4), %s283_s3, 128  }
  0x33   : > { %906 = vsyncadd (%p1020_p4), %s283_s3, 4294967168  ;;  %s292_s4 = sand.u32 1, %s1011_s24   ;;  %s296_s6 = scalar_lea.vmem [#allocation5], %s588_s2 }
  0x34   : > { %s293_s22 = scalar_lea.sflag [#allocation6], %s292_s4 }
  0x35   : > { %908 = dma.done.wait (%p1020_p4), %s293_s22, 128  }
  0x36   : > { %910 = vsyncadd (%p1020_p4), %s293_s22, 4294967168 }
  0x37   : > { %912 = dma.done.wait (%p60_p1), [#allocation6], 64  }
  0x38   : > { %914 = vsyncadd (%p60_p1), [#allocation6], 4294967232 }
  0x39   : > { %916 = dma.done.wait (%p60_p1), [#allocation9], 128  }
  0x3a   : > { %918 = vsyncadd (%p60_p1), [#allocation9], 4294967168  ;;  %v348_v0 = vld [vmem:[%s286_s9] sm:$0xff]  ;;  %vm356_vm0 = vcmask 1043456   ;;  %v350_v1 = vld [vmem:[%s296_s6] sm:$0xff]  ;;  %vm352_vm1 = vcmask 64512  }
  0x3b   : > { %v349_v2 = vpack.c.bf16 %v348_v0, %v348_v0  ;;  %v351_v3 = vpack.c.bf16 %v350_v1, %v350_v1  ;;  %v345_v6 = vld [vmem:[#allocation7] sm:$0xf]  ;;  %v346_v7 = vld [vmem:[#allocation8] sm:$0xf]  ;;  %v347_v25 = vld [vmem:[#allocation10] sm:$0xf] }
  0x3c   : > { %s598_s24 = sshll.u32 %s937_s21, 2  ;;  %s593_s26 = sshll.u32 %s1085_s30, 2 }
  0x3d   : > { %v358_v4 = vsel %vm356_vm0, %v349_v2, 0  ;;  %v377_v5 = vsel %vm356_vm0, %v351_v3, 0  ;;  %s439_s11 = scalar_lea.hbm %s1156_s5, %s598_s24  ;;  %s343_s12 = scalar_lea.vmem [#allocation11], %s593_s26 }
  0x3e   : > { %367 = vmatpush.bf16.msra.mxu0 %v358_v4  ;;  %386 = vmatpush.bf16.msra.mxu1 %v377_v5  ;;  %s441_s14 = sshll.u32 %s343_s12, 4  ;;  %s443_s15 = sshll.u32 %s439_s11, 4  ;;  %s442_s14 = int_to_ptr.vmem [resolvable:$true] %s441_s14  ;;  %s444_s15 = int_to_ptr.hbm [resolvable:$true] %s443_s15 }
  0x3f   : > { %s428_s16 = scalar_lea.sflag [#allocation4], %s1085_s30  ;;  %s865_s17 = sshra.s32 %s444_s15, 4  ;;  %s866_s17 = int_to_ptr.hbm [resolvable:$true] %s865_s17 }
  0x40   : > { %s867_s25 = scalar_lea.hbm %s866_s17, 4  ;;  %s871_s29 = scalar_lea.hbm %s1156_s5, 8 }
  0x41   : > { %594 = vmatmul.msk.bf16.vlgmr.msra.gmra.mxu0 %vm352_vm1, %v345_v6  ;;  %595 = vmatmul.msk.bf16.vlgmr.msra.gmra.mxu1 %vm352_vm1, %v346_v7  ;;  %p868_p1 = scmp.ne.s32.totalorder %s866_s17, %s867_s25  ;;  %p872_p11 = scmp.lt.s32.totalorder %s866_s17, %s1156_s5 }
  0x42   : > { %p873_p12 = scmp.lt.s32.totalorder %s871_s29, %s867_s25 }
  0x43   : > { %p869_p4 = pnand %p868_p1, %p1061_p5 }
  0x44   : > { %p874_p13 = por %p873_p12, %p872_p11 }
  0x45   : > { %p870_p8 = pneg %p869_p4 }
  0x47   : > { %p875_p0 = pnand %p874_p13, %p870_p8 }
  0xbe   : > { %v369_v8 = vpop.f32.mrf.mxu0  ;;  %v388_v9 = vpop.f32.mrf.mxu1 }
  0xbf   : > { %vm392_vm2 = vcmp.ge.f32.partialorder %v369_v8, 0.0  ;;  %v393_v10 = vmul.f32 0.1, %v369_v8  ;;  %vm395_vm3 = vcmp.ge.f32.partialorder %v388_v9, 0.0  ;;  %v396_v11 = vmul.f32 0.1, %v388_v9 }
  0xc1   : > { %v394_v12 = vsel %vm392_vm2, %v369_v8, %v393_v10  ;;  %v397_v13 = vsel %vm395_vm3, %v388_v9, %v396_v11 }
  0xc2   : > { %v398_v14 = vsub.f32 %v394_v12, %v397_v13 }
  0xc4   : > { %v399_v15 = vmul.f32 0.5, %v398_v14 }
  0xc6   : > { %v371_v16 = vpop.f32.mrf.mxu0  ;;  %v390_v17 = vpop.f32.mrf.mxu1  ;;  %699 = vtanh.f32 %v399_v15 }
  0xcc   : > { %v700_v18 = vpop.eup %699 }
  0xcd   : > { %v401_v19 = vmul.f32 0.5, %v700_v18 }
  0xcf   : > { %v402_v20 = vadd.f32 0.5, %v401_v19 }
  0xd1   : > { %v403_v21 = vmul.f32 %v402_v20, %v398_v14 }
  0xd3   : > { %v404_v22 = vadd.f32 %v403_v21, %v397_v13 }
  0xd5   : > { %v405_v23 = vpack.c.bf16 %v404_v22, %v404_v22 }
  0xd7   : > { %v410_v24 = vsel %vm356_vm0, %v405_v23, 0 }
  0xd8   : > { %419 = vmatpush.bf16.msra.mxu2 %v410_v24 }
  0xdb   : > { %596 = vmatmul.msk.bf16.vlgmr.msra.gmra.mxu2 %vm352_vm1, %v347_v25 }
 0x15e   : > { %v421_v26 = vpop.f32.mrf.mxu2 }
 0x15f   : > { %v425_v27 = vpack.c.bf16 %v421_v26, %v421_v26 }
 0x161   : > { %426 = vst [vmem:[%s343_s12] sm:$0xf] %v425_v27 }
 0x162   : > { %878 = shalt.err (!%p875_p0)
}
 0x163   : > { %617 = dma.vmem_to_hbm [thread:$0]  (%p1061_p5), %s442_s14, 64, %s444_s15, %s428_s16  }
 0x166   : > { %v423_v28 = vpop.f32.mrf.mxu2 }
 0x167 PF: > { %s455_s30 = sand.u32 1, %s925_s18   ;;  %p637_p3 = pnand %p582_p9, %p1025_p6 }
 0x168   : > { %s456_s3 = scalar_lea.sflag [#allocation4], %s455_s30 }
 0x169   : > { %p638_p7 = pneg %p637_p3 }
 0x16b   : > { %920 = dma.done.wait (%p638_p7), %s456_s3, 64  }
 0x16c   : > { %922 = vsyncadd (%p638_p7), %s456_s3, 4294967232  ;;  %s25_s23 = sadd.s32 1, %s945_s23   ;;  %s1173_s7 = sld [smem:[#allocation19_spill]] }
 0x16d   : > { %p22_p10 = scmp.ge.s32.totalorder %s25_s23, 4   ;;  %s1174_s21 = sld [smem:[#allocation17_spill]] }
 0x16e   : > { %s1175_s22 = sld [smem:[#allocation18_spill]]  ;;  %s1176_s18 = smov %s929_s19 }
 0x16f   : > { %s1177_s19 = smov %s933_s20  ;;  %24 = sbr.rel (!%p22_p10) target bundleno = 13 (0xd), region = 110 }
 0x172   : > { %s1178_s20 = smov %s1173_s7 }
 0x174   :  { %462 = vsyncpa [#allocation3], 1 }
 0x175   :  { %464 = vsyncpa [#allocation3 + $0x1], 1 }
 0x176   :  { %465 = vsyncpa [#allocation6], 1 }
 0x177   :  { %467 = vsyncpa [#allocation6 + $0x1], 1 }
 0x178   :  { %468 = vsyncpa [#allocation9], 1 }
 0x179   :  { %469 = vsyncpa [#allocation4], 1 }
 0x17a   :  { %471 = vsyncpa [#allocation4 + $0x1], 1 }

</bundles_post_ra>
